<compile_context>
chip_gen: v5e
topology: v5e:2x2
jax: 0.10.0
libtpu: 0.0.40
codegen_flags: <defaults>
</compile_context>

<pallas_src>
import functools
import math

import jax
import jax.numpy as jnp
from jax import lax
from jax.experimental import pallas as pl
from jax.experimental.pallas import tpu as pltpu


def _round_up(v, m):
    return (v + m - 1) // m * m


# ----------------------------------------------------------------------------
# Per-chip VMEM / core introspection (defensive: falls back to safe defaults).
# ----------------------------------------------------------------------------
_FALLBACK_VMEM_CAPACITY = 64 * 1024 * 1024  # conservative: v7x per-TensorCore


def _vmem_capacity_bytes():
    try:
        cap = int(pltpu.get_tpu_info().vmem_capacity_bytes)
        if cap > 0:
            return cap
    except Exception:
        pass
    return _FALLBACK_VMEM_CAPACITY


def _default_dimension_semantics(grid_n):
    """CORE_PARALLEL only when we positively detect a multi-TC part (v7x);
    plain 'parallel' otherwise (v5e/v6e have a single TensorCore)."""
    try:
        info = pltpu.get_tpu_info()
        for name in ("num_cores", "cores_per_chip", "core_count", "num_tensorcores"):
            v = getattr(info, name, None)
            if isinstance(v, int) and v > 1 and grid_n >= v:
                return (pltpu.CORE_PARALLEL,)
    except Exception:
        pass
    return ("parallel",)


def _pick_block_n(n_min, k_pad, b_pad, *, x_itemsize, w_itemsize, out_bytes,
                  w_buffers, vmem_budget):
    """Largest lane-aligned class tile whose working set fits the per-core VMEM
    budget. Accounts for double-buffered resident inputs (Pallas allocates two
    buffers even with a constant index_map), the streamed W / inv_w tiles, and
    the double-buffered outputs."""
    resident = (2 * b_pad * k_pad * x_itemsize   # x (mxu dtype)
                + 2 * b_pad * 4                  # inv_x (f32)
                + 2 * b_pad * 4)                 # label (int32)
    margin = 2 * 1024 * 1024                     # internal scratch / vregs
    for tn in (4096, 2048, 1024, 512, 256, 128):
        if tn > n_min:
            continue
        need = (resident + margin
                + w_buffers * tn * k_pad * w_itemsize   # streamed W tiles
                + 2 * tn * 4                            # streamed inv_w tiles
                + 2 * b_pad * tn * out_bytes)           # double-buffered outputs
        if need <= vmem_budget:
            return tn
    return 128


# ----------------------------------------------------------------------------
# Kernel: one (B, block_n) tile of the ArcFace head.
# ----------------------------------------------------------------------------
def _arcmargin_kernel(x_ref, inv_x_ref, w_ref, inv_w_ref, label_ref, *out_refs,
                      s, cos_m, sin_m, th, mm, block_n, emit_cos):
    """
    x_ref:     (B, K)        resident, already in MXU dtype
    inv_x_ref: (B, 1)  f32   resident, 1/max(||x||, eps)
    w_ref:     (TN, K)       streamed raw weight tile (f32 or bf16)
    inv_w_ref: (1, TN) f32   streamed, 1/max(||w||, eps) for this tile's rows
    label_ref: (B, 1)  int32 resident
    outputs:   [s*cosine,] margin output   -- (B, TN) each
    """
    if emit_cos:
        cos_out_ref, out_ref = out_refs
    else:
        (out_ref,) = out_refs

    # cosine = x_n @ w_n.T, with both normalizations folded into cheap
    # (B, TN)-sized post-matmul scales. Contraction over the last (lane) axis
    # of BOTH operands -- MXU-native, no transposed weight tile.
    dot = lax.dot_general(x_ref[...], w_ref[...],
                          dimension_numbers=(((1,), (1,)), ((), ())),
                          preferred_element_type=jnp.float32)        # (B, TN)
    cosine = dot * inv_x_ref[...] * inv_w_ref[...]

    sine = jnp.sqrt(jnp.clip(1.0 - cosine * cosine, 0.0, 1.0))
    phi = cosine * cos_m - sine * sin_m
    phi = jnp.where(cosine > th, phi, cosine - mm)

    # Fused one-hot blend with GLOBAL column indices (grid tiles the class axis).
    col_ids = (pl.program_id(0) * block_n
               + lax.broadcasted_iota(jnp.int32, cosine.shape, 1))
    out = jnp.where(col_ids == label_ref[...], phi, cosine) * s

    if emit_cos:
        cos_out_ref[...] = (cosine * s).astype(cos_out_ref.dtype)
    out_ref[...] = out.astype(out_ref.dtype)


# ----------------------------------------------------------------------------
# Wrapper
# ----------------------------------------------------------------------------
def arc_margin_forward(x, weight, label, *, s=30.0, m1=0.5,
                       block_n=None, mxu_dtype=jnp.float32,
                       with_scaled_cosine=True, cos_dtype=jnp.float32,
                       out_dtype=jnp.float32, w_buffers=2,
                       dimension_semantics=None):
    """Pallas ArcMargin forward.

    Returns (s * cosine, margin_output) by default; only the margin output
    when `with_scaled_cosine=False` (cuts ~half the HBM writeback).
    `mxu_dtype=jnp.bfloat16` streams x and W in bf16 from HBM (norms and the
    accumulation stay in f32)."""
    B, K = x.shape
    N, Kw = weight.shape
    assert K == Kw, "x and weight feature dims must match"

    cos_m = math.cos(m1)
    sin_m = math.sin(m1)
    th = math.cos(math.pi - m1)
    mm = math.sin(math.pi - m1) * m1

    mxu_dtype = jnp.dtype(mxu_dtype)
    cos_dtype = jnp.dtype(cos_dtype)
    out_dtype = jnp.dtype(out_dtype)

    # Pad to TPU-friendly shapes: B -> x8, K -> x128, N -> x block_n.
    b_pad = _round_up(B, 8)
    k_pad = _round_up(K, 128)
    n_min = _round_up(N, 128)

    vmem_cap = _vmem_capacity_bytes()
    vmem_budget = int(vmem_cap * 0.65)
    vmem_limit = int(vmem_cap * 0.80)

    if block_n is None:
        out_bytes = out_dtype.itemsize + (cos_dtype.itemsize if with_scaled_cosine else 0)
        block_n = _pick_block_n(n_min, k_pad, b_pad,
                                x_itemsize=mxu_dtype.itemsize,
                                w_itemsize=mxu_dtype.itemsize,
                                out_bytes=out_bytes,
                                w_buffers=w_buffers,
                                vmem_budget=vmem_budget)
    assert block_n % 128 == 0, "block_n must be a multiple of 128"
    n_pad = _round_up(N, block_n)
    grid_n = n_pad // block_n

    # Once-per-call preprocessing (fused by XLA with the pad/cast pass):
    # f32-exact row norms (F.normalize's 1/max(||v||, 1e-12)) and the
    # MXU-dtype copies of x and W the kernel streams. Zero padding is inert:
    # padded rows/columns produce cosine == 0 and are sliced off below;
    # padded labels are -1 so they never match a real column index.
    x32 = x.astype(jnp.float32)
    w32 = weight.astype(jnp.float32)
    inv_x = 1.0 / jnp.maximum(jnp.linalg.norm(x32, axis=-1, keepdims=True), 1e-12)
    inv_w = 1.0 / jnp.maximum(jnp.linalg.norm(w32, axis=-1, keepdims=True), 1e-12)

    xp = jnp.pad(x32.astype(mxu_dtype), ((0, b_pad - B), (0, k_pad - K)))
    wp = jnp.pad(w32.astype(mxu_dtype), ((0, n_pad - N), (0, k_pad - K)))
    inv_x_p = jnp.pad(inv_x, ((0, b_pad - B), (0, 0)))
    inv_w_p = jnp.pad(inv_w.reshape(1, N), ((0, 0), (0, n_pad - N)))
    lp = jnp.pad(label.reshape(-1).astype(jnp.int32), (0, b_pad - B),
                 constant_values=-1).reshape(b_pad, 1)

    if dimension_semantics is None:
        dimension_semantics = _default_dimension_semantics(grid_n)

    kernel = functools.partial(
        _arcmargin_kernel, s=float(s), cos_m=cos_m, sin_m=sin_m, th=th, mm=mm,
        block_n=block_n, emit_cos=with_scaled_cosine)

    w_spec_kwargs = {}
    if w_buffers != 2:
        w_spec_kwargs["pipeline_mode"] = pl.Buffered(w_buffers)

    in_specs = [
        pl.BlockSpec((b_pad, k_pad), lambda j: (0, 0)),                    # x: resident
        pl.BlockSpec((b_pad, 1), lambda j: (0, 0)),                        # 1/||x||: resident
        pl.BlockSpec((block_n, k_pad), lambda j: (j, 0), **w_spec_kwargs), # W: streamed
        pl.BlockSpec((1, block_n), lambda j: (0, j)),                      # 1/||w||: streamed
        pl.BlockSpec((b_pad, 1), lambda j: (0, 0)),                        # label: resident
    ]
    out_block = pl.BlockSpec((b_pad, block_n), lambda j: (0, j))
    if with_scaled_cosine:
        out_shape = (jax.ShapeDtypeStruct((b_pad, n_pad), cos_dtype),
                     jax.ShapeDtypeStruct((b_pad, n_pad), out_dtype))
        out_specs = (out_block, out_block)
    else:
        out_shape = jax.ShapeDtypeStruct((b_pad, n_pad), out_dtype)
        out_specs = out_block

    res = pl.pallas_call(
        kernel,
        out_shape=out_shape,
        grid=(grid_n,),
        in_specs=in_specs,
        out_specs=out_specs,
        compiler_params=pltpu.CompilerParams(
            dimension_semantics=dimension_semantics,
            vmem_limit_bytes=vmem_limit,
        ),
    )(xp, inv_x_p, wp, inv_w_p, lp)

    if with_scaled_cosine:
        cos_s, out = res
        return cos_s[:B, :N], out[:B, :N]
    return res[:B, :N]


# ----------------------------------------------------------------------------
# Reference / test
# ----------------------------------------------------------------------------
def _xavier_uniform(key, out_feat, in_feat):
    # nn.init.xavier_uniform_ on an (out_feat, in_feat) Linear-style weight.
    bound = math.sqrt(6.0 / (in_feat + out_feat))
    return jax.random.uniform(key, (out_feat, in_feat), jnp.float32,
                              minval=-bound, maxval=bound)


def _reference(x, weight, label, *, s=30.0, m1=0.5):
    """Plain-JAX reference matching the PyTorch forward."""
    cos_m, sin_m = math.cos(m1), math.sin(m1)
    th = math.cos(math.pi - m1)
    mm = math.sin(math.pi - m1) * m1
    x_n = x / jnp.maximum(jnp.linalg.norm(x, axis=-1, keepdims=True), 1e-12)
    w_n = weight / jnp.maximum(jnp.linalg.norm(weight, axis=-1, keepdims=True), 1e-12)
    cosine = x_n @ w_n.T
    sine = jnp.sqrt(jnp.clip(1.0 - cosine ** 2, 0.0, 1.0))
    phi = cosine * cos_m - sine * sin_m
    phi = jnp.where(cosine > th, phi, cosine - mm)
    one_hot = jax.nn.one_hot(label, cosine.shape[1], dtype=jnp.float32)
    output = (one_hot * phi + (1.0 - one_hot) * cosine) * s
    return s * cosine, output


if __name__ == "__main__":
    # Deliberately unaligned small shapes: exercises batch/feature/class
    # padding and (with block_n=128) a 2-tile class grid, so the global-column
    # one-hot offset path is tested.
    B, in_feat, out_feat = 6, 40, 200
    key = jax.random.PRNGKey(0)
    kx, kw, kl = jax.random.split(key, 3)

    x = jax.random.normal(kx, (B, in_feat), jnp.float32)
    weight = _xavier_uniform(kw, out_feat, in_feat)
    label = jax.random.randint(kl, (B,), 0, out_feat, jnp.int32)

    ref_cos, ref_out = _reference(x, weight, label, s=30.0, m1=0.5)

    # 1) f32 path (exact semantics of the PyTorch module), 2 class tiles.
    s_cos, out = arc_margin_forward(x, weight, label, s=30.0, m1=0.5, block_n=128)
    jax.block_until_ready((s_cos, out))
    assert jnp.allclose(s_cos, ref_cos, atol=1e-4, rtol=1e-4)
    assert jnp.allclose(out, ref_out, atol=1e-4, rtol=1e-4)

    # 2) bf16-streamed fast path: weight (and x) travel HBM->VMEM->MXU in bf16,
    #    s*cosine also written back in bf16. Loose check (~1e-2 cosine error).
    s_cos16, out16 = arc_margin_forward(x, weight, label, s=30.0, m1=0.5,
                                        block_n=128, mxu_dtype=jnp.bfloat16,
                                        cos_dtype=jnp.bfloat16)
    jax.block_until_ready((s_cos16, out16))
    assert bool(jnp.all(jnp.isfinite(s_cos16.astype(jnp.float32))))
    assert bool(jnp.all(jnp.isfinite(out16)))
    assert float(jnp.max(jnp.abs(s_cos16.astype(jnp.float32) - ref_cos))) < 1.0

    # 3) margin-only output (skips the s*cosine writeback), auto block_n.
    out_only = arc_margin_forward(x, weight, label, s=30.0, m1=0.5,
                                  with_scaled_cosine=False)
    jax.block_until_ready(out_only)
    assert jnp.allclose(out_only, ref_out, atol=1e-4, rtol=1e-4)

    print("KERNEL_OK")
</pallas_src>

<mosaic_0001>
module attributes {stable_mosaic.version = 11 : i64} {
  func.func @_arcmargin_kernel(%arg0: i32, %arg1: memref<8x128xf32, #tpu.memory_space<vmem>>, %arg2: memref<8x1xf32, #tpu.memory_space<vmem>>, %arg3: memref<128x128xf32, #tpu.memory_space<vmem>>, %arg4: memref<1x128xf32, #tpu.memory_space<vmem>>, %arg5: memref<8x1xi32, #tpu.memory_space<vmem>>, %arg6: memref<8x128xf32, #tpu.memory_space<vmem>>, %arg7: memref<8x128xf32, #tpu.memory_space<vmem>>) attributes {dimension_semantics = [#tpu.dimension_semantics<parallel>], iteration_bounds = array<i64: 2>, scalar_prefetch = 0 : i64, scratch_operands = 0 : i64, tpu.core_type = #tpu.core_type<tc>, window_params = [{pipeline_mode = #tpu.pipeline_mode<synchronous>, transform_indices = @transform_0, window_bounds = array<i64: 8, 128>}, {pipeline_mode = #tpu.pipeline_mode<synchronous>, transform_indices = @transform_1, window_bounds = array<i64: 8, 1>}, {transform_indices = @transform_2, window_bounds = array<i64: 128, 128>}, {transform_indices = @transform_3, window_bounds = array<i64: 1, 128>}, {pipeline_mode = #tpu.pipeline_mode<synchronous>, transform_indices = @transform_4, window_bounds = array<i64: 8, 1>}, {transform_indices = @transform_5, window_bounds = array<i64: 8, 128>}, {transform_indices = @transform_6, window_bounds = array<i64: 8, 128>}]} {
    %c0 = arith.constant 0 : index
    %c0_0 = arith.constant 0 : index
    %0 = vector.load %arg1[%c0, %c0_0] : memref<8x128xf32, #tpu.memory_space<vmem>>, vector<8x128xf32>
    %c0_1 = arith.constant 0 : index
    %c0_2 = arith.constant 0 : index
    %1 = vector.load %arg3[%c0_1, %c0_2] : memref<128x128xf32, #tpu.memory_space<vmem>>, vector<128x128xf32>
    %cst = arith.constant dense<0.000000e+00> : vector<8x128xf32>
    %2 = tpu.matmul %0, %1, %cst {dimension_numbers = #tpu.dot_dimension_numbers<[1], [1], [0], [0], [0, 0, 1, 0], [], []>} : vector<8x128xf32>, vector<128x128xf32>, vector<8x128xf32> -> vector<8x128xf32>
    %c0_3 = arith.constant 0 : index
    %c0_4 = arith.constant 0 : index
    %3 = vector.load %arg2[%c0_3, %c0_4] : memref<8x1xf32, #tpu.memory_space<vmem>>, vector<8x1xf32>
    %4 = vector.broadcast %3 : vector<8x1xf32> to vector<8x128xf32>
    %5 = arith.mulf %2, %4 : vector<8x128xf32>
    %c0_5 = arith.constant 0 : index
    %c0_6 = arith.constant 0 : index
    %6 = vector.load %arg4[%c0_5, %c0_6] : memref<1x128xf32, #tpu.memory_space<vmem>>, vector<1x128xf32>
    %7 = vector.broadcast %6 : vector<1x128xf32> to vector<8x128xf32>
    %8 = arith.mulf %5, %7 : vector<8x128xf32>
    %9 = arith.mulf %8, %8 : vector<8x128xf32>
    %cst_7 = arith.constant 1.000000e+00 : f32
    %10 = vector.broadcast %cst_7 : f32 to vector<8x128xf32>
    %11 = arith.subf %10, %9 : vector<8x128xf32>
    %cst_8 = arith.constant 0.000000e+00 : f32
    %cst_9 = arith.constant 1.000000e+00 : f32
    %12 = vector.broadcast %cst_8 : f32 to vector<8x128xf32>
    %13 = arith.maximumf %12, %11 : vector<8x128xf32>
    %14 = vector.broadcast %cst_9 : f32 to vector<8x128xf32>
    %15 = arith.minimumf %14, %13 : vector<8x128xf32>
    %16 = math.sqrt %15 : vector<8x128xf32>
    %cst_10 = arith.constant 0.87758255 : f32
    %17 = vector.broadcast %cst_10 : f32 to vector<8x128xf32>
    %18 = arith.mulf %8, %17 : vector<8x128xf32>
    %cst_11 = arith.constant 0.47942555 : f32
    %19 = vector.broadcast %cst_11 : f32 to vector<8x128xf32>
    %20 = arith.mulf %16, %19 : vector<8x128xf32>
    %21 = arith.subf %18, %20 : vector<8x128xf32>
    %cst_12 = arith.constant -0.87758255 : f32
    %22 = vector.broadcast %cst_12 : f32 to vector<8x128xf32>
    %23 = arith.cmpf ogt, %8, %22 : vector<8x128xf32>
    %cst_13 = arith.constant 0.239712775 : f32
    %24 = vector.broadcast %cst_13 : f32 to vector<8x128xf32>
    %25 = arith.subf %8, %24 : vector<8x128xf32>
    %26 = arith.select %23, %21, %25 : vector<8x128xi1>, vector<8x128xf32>
    %c128_i32 = arith.constant 128 : i32
    %27 = arith.muli %arg0, %c128_i32 : i32
    %28 = tpu.iota {dimensions = array<i32: 1>} : vector<8x128xi32>
    %29 = vector.broadcast %27 : i32 to vector<8x128xi32>
    %30 = arith.addi %29, %28 : vector<8x128xi32>
    %c0_14 = arith.constant 0 : index
    %c0_15 = arith.constant 0 : index
    %31 = vector.load %arg5[%c0_14, %c0_15] : memref<8x1xi32, #tpu.memory_space<vmem>>, vector<8x1xi32>
    %32 = vector.broadcast %31 : vector<8x1xi32> to vector<8x128xi32>
    %33 = arith.cmpi eq, %30, %32 : vector<8x128xi32>
    %34 = arith.select %33, %26, %8 : vector<8x128xi1>, vector<8x128xf32>
    %cst_16 = arith.constant 3.000000e+01 : f32
    %35 = vector.broadcast %cst_16 : f32 to vector<8x128xf32>
    %36 = arith.mulf %34, %35 : vector<8x128xf32>
    %cst_17 = arith.constant 3.000000e+01 : f32
    %37 = vector.broadcast %cst_17 : f32 to vector<8x128xf32>
    %38 = arith.mulf %8, %37 : vector<8x128xf32>
    %c0_18 = arith.constant 0 : index
    %c0_19 = arith.constant 0 : index
    %39 = vector.load %arg6[%c0_18, %c0_19] : memref<8x128xf32, #tpu.memory_space<vmem>>, vector<8x128xf32>
    tpu.vector_store %arg6[%c0_18, %c0_19], %38 {strides = array<i32>} : memref<8x128xf32, #tpu.memory_space<vmem>>, vector<8x128xf32>,
    %c0_20 = arith.constant 0 : index
    %c0_21 = arith.constant 0 : index
    %40 = vector.load %arg7[%c0_20, %c0_21] : memref<8x128xf32, #tpu.memory_space<vmem>>, vector<8x128xf32>
    tpu.vector_store %arg7[%c0_20, %c0_21], %36 {strides = array<i32>} : memref<8x128xf32, #tpu.memory_space<vmem>>, vector<8x128xf32>,
    return
  }
  func.func @transform_0(%arg0: i32) -> (i32, i32) {
    %c0_i32 = arith.constant 0 : i32
    %c0_i32_0 = arith.constant 0 : i32
    %c0_i32_1 = arith.constant 0 : i32
    return %c0_i32, %c0_i32_0 : i32, i32
  }
  func.func @transform_1(%arg0: i32) -> (i32, i32) {
    %c0_i32 = arith.constant 0 : i32
    %c0_i32_0 = arith.constant 0 : i32
    %c0_i32_1 = arith.constant 0 : i32
    return %c0_i32, %c0_i32_0 : i32, i32
  }
  func.func @transform_2(%arg0: i32) -> (i32, i32) {
    %c0_i32 = arith.constant 0 : i32
    %c0_i32_0 = arith.constant 0 : i32
    return %arg0, %c0_i32 : i32, i32
  }
  func.func @transform_3(%arg0: i32) -> (i32, i32) {
    %c0_i32 = arith.constant 0 : i32
    %c0_i32_0 = arith.constant 0 : i32
    return %c0_i32, %arg0 : i32, i32
  }
  func.func @transform_4(%arg0: i32) -> (i32, i32) {
    %c0_i32 = arith.constant 0 : i32
    %c0_i32_0 = arith.constant 0 : i32
    %c0_i32_1 = arith.constant 0 : i32
    return %c0_i32, %c0_i32_0 : i32, i32
  }
  func.func @transform_5(%arg0: i32) -> (i32, i32) {
    %c0_i32 = arith.constant 0 : i32
    %c0_i32_0 = arith.constant 0 : i32
    return %c0_i32, %arg0 : i32, i32
  }
  func.func @transform_6(%arg0: i32) -> (i32, i32) {
    %c0_i32 = arith.constant 0 : i32
    %c0_i32_0 = arith.constant 0 : i32
    return %c0_i32, %arg0 : i32, i32
  }
}

</mosaic_0001>

<bundles_post_ra>
// kernel: tpu_custom_call.1
= control target key start
LH: loop header
LB: loop body
LE: loop exit
PB: predicated region body
PF: predicated region fallthrough
CT: control target
= control target key end

     0   :  { %12 = vsyncpa [#allocation3], 0  ;;  %s959_s0 = inlined_call_operand.vmem [shape: f32[8,128], index: 0, kind: input, shape index: {}]   ;;  %s960_s1 = inlined_call_operand.vmem [shape: f32[8,1], index: 1, kind: input, shape index: {}]   ;;  %s961_s2 = inlined_call_operand.hbm [shape: f32[256,128], index: 2, kind: input, shape index: {}]   ;;  %s962_s3 = inlined_call_operand.vmem [shape: f32[1,256], index: 3, kind: input, shape index: {}]   ;;  %s963_s4 = inlined_call_operand.vmem [shape: s32[8,1], index: 4, kind: input, shape index: {}]   ;;  %s964_s5 = inlined_call_operand.hbm [shape: f32[8,256], index: 5, kind: output, shape index: {0}]   ;;  %s965_s6 = inlined_call_operand.hbm [shape: f32[8,256], index: 6, kind: output, shape index: {1}]  }
   0x1   :  { %14 = vsyncpa [#allocation3 + $0x1], 0 }
   0x2   :  { %15 = vsyncpa [#allocation4], 0 }
   0x3   :  { %17 = vsyncpa [#allocation4 + $0x1], 0 }
   0x4   :  { %18 = vsyncpa [#allocation7], 0 }
   0x5   :  { %20 = vsyncpa [#allocation7 + $0x1], 0  ;;  %s776_s21 = smov 0   ;;  %s778_s22 = smov 0  }
   0x6   :  { %s780_s23 = smov 0   ;;  %s782_s24 = smov 0  }
   0x7 LB: > { %s797_s25 = sadd.s32 4294967295, %s736_s24   ;;  %s531_s26 = sadd.s32 4294967294, %s736_s24   ;;  %s736_s24 = sphi %s782_s24, %s975_s24   ;;  %s732_s23 = sphi %s780_s23, %s974_s23   ;;  %s728_s22 = sphi %s778_s22, %s973_s22   ;;  %s724_s21 = sphi %s776_s21, %s972_s21  }
   0x8   : > { %s801_s27 = sadd.s32 1, %s736_s24   ;;  %s75_s28 = sadd.s32 1, %s732_s23 }
   0x9   : > { %s72_s29 = ssub.s32 %s736_s24, %s801_s27  ;;  %p82_p0 = scmp.ne.s32.totalorder %s732_s23, %s728_s22 }
   0xa   : > { %p73_p1 = scmp.eq.s32.totalorder %s72_s29, 0  ;;  %p83_p2 = scmp.eq.s32.totalorder %s736_s24, 0 }
   0xb   : > { %p88_p3 = scmp.ne.s32.totalorder %s728_s22, %s724_s21  ;;  %p89_p4 = scmp.eq.s32.totalorder %s797_s25, 0 }
   0xc   : > { %s813_s30 = scalar_select %p73_p1, %s732_s23, %s75_s28  }
   0xd   : > { %p815_p5 = por %p83_p2, %p82_p0  ;;  %p819_p6 = por %p89_p4, %p88_p3 }
   0xe   : > { %p159_p7 = scmp.eq.s32.totalorder %s797_s25, 1  ;;  %p165_p8 = scmp.eq.s32.totalorder %s531_s26, 1 }
   0xf   : > { %p567_p10 = scmp.lt.s32.totalorder %s736_s24, 2  ;;  %s220_s11 = sand.u32 1, %s732_s23  }
  0x10   : > { %p826_p11 = por %p159_p7, %p82_p0  ;;  %p830_p12 = por %p165_p8, %p88_p3 }
  0x11   : > { %s549_s12 = sshll.u32 %s736_s24, 7  ;;  %s534_s13 = sshll.u32 %s220_s11, 7 }
  0x12   : > { %s229_s16 = scalar_lea.hbm %s961_s2, %s549_s12  ;;  %s224_s18 = scalar_lea.vmem [#allocation2], %s534_s13 }
  0x13   : > { %s230_s17 = sshll.u32 %s229_s16, 4  ;;  %s232_s19 = sshll.u32 %s224_s18, 4  ;;  %s231_s17 = int_to_ptr.hbm [resolvable:$true] %s230_s17  ;;  %s233_s19 = int_to_ptr.vmem [resolvable:$true] %s232_s19 }
  0x14   : > { %p841_p13 = pnand %p567_p10, %p815_p5  ;;  %p537_p0 = scmp.ge.s32.totalorder %s736_s24, 1 }
  0x15   : > { %p246_p1 = scmp.lt.s32.totalorder %s736_s24, 3  ;;  %s221_s26 = scalar_lea.sflag [#allocation3], %s220_s11 }
  0x16   : > { %s608_s28 = sshra.s32 %s231_s17, 4  ;;  %p612_p3 = pneg %p841_p13  ;;  %s609_s28 = int_to_ptr.hbm [resolvable:$true] %s608_s28 }
  0x17   : > { %s610_s29 = scalar_lea.hbm %s609_s28, 128  ;;  %s615_s7 = scalar_lea.hbm %s961_s2, 256 }
  0x18   : > { %p611_p2 = scmp.ne.s32.totalorder %s609_s28, %s610_s29  ;;  %p616_p5 = scmp.lt.s32.totalorder %s609_s28, %s961_s2 }
  0x19   : > { %p617_p8 = scmp.lt.s32.totalorder %s615_s7, %s610_s29 }
  0x1a   : > { %p613_p4 = pnand %p612_p3, %p611_p2 }
  0x1b   : > { %p618_p10 = por %p617_p8, %p616_p5 }
  0x1c   : > { %p614_p7 = pneg %p613_p4 }
  0x1e   : > { %p619_p9 = pnand %p618_p10, %p614_p7 }
  0x20   : > { %622 = shalt.err (!%p619_p9)
}
  0x21   : > { %s738_s11 = smov 128   ;;  %s739_s16 = smov 8  }
  0x22   : > { %559 = dma.hbm_to_vmem [thread:$0]  (!%p841_p13), %s231_s17, 2048, %s233_s19, %s221_s26, %s738_s11, %s738_s11, %s739_s16  }
  0x23   : > { %p247_p2 = pnand %p537_p0, %p246_p1 }
  0x24   : > { %s862_s18 = sand.u32 (!%p247_p2), 1, %s728_s22  }
  0x25   : > { %250 = sbr.rel (%p247_p2) target bundleno = 277 (0x115), region = 40  ;;  %s538_s28 = sshll.u32 (!%p247_p2), %s862_s18, 7 }
  0x26   : > { %s253_s29 = scalar_lea.sflag (!%p247_p2), [#allocation3], %s862_s18  ;;  %s866_s12 = scalar_lea.vmem (!%p247_p2), [#allocation2], %s538_s28 }
  0x2a   : > { %711 = dma.done.wait (%p819_p6), %s253_s29, 2048  }
  0x2b   : > { %713 = vsyncadd (%p819_p6), %s253_s29, 4294965248  ;;  %v314_v0 = vld [vmem:[%s866_s12 + $0x78] sm:$0xff]  ;;  %v313_v1 = vld [vmem:[%s866_s12 + $0x70] sm:$0xff]  ;;  %p295_p6 = scmp.lt.s32.totalorder %s797_s25, 1  ;;  %v740_v10 = vmov 0   ;;  %s545_s16 = sshll.u32 %s797_s25, 3 }
  0x2c   : > { %315 = vmatpush.xpose.msra.mxu0 %v314_v0  ;;  %v312_v2 = vld [vmem:[%s866_s12 + $0x68] sm:$0xff]  ;;  %v311_v3 = vld [vmem:[%s866_s12 + $0x60] sm:$0xff]  ;;  %v310_v4 = vld [vmem:[%s866_s12 + $0x58] sm:$0xff]  ;;  %604 = vset.pattern.permute.xlu0 %v740_v10  ;;  %s539_s28 = sshll.u32 %s862_s18, 3  ;;  %s400_s17 = scalar_lea.hbm %s964_s5, %s545_s16 }
  0x2d   : > { %v309_v5 = vld [vmem:[%s866_s12 + $0x50] sm:$0xff]  ;;  %v308_v6 = vld [vmem:[%s866_s12 + $0x48] sm:$0xff]  ;;  %v307_v7 = vld [vmem:[%s866_s12 + $0x40] sm:$0xff]  ;;  %s296_s8 = scalar_select %p295_p6, %s797_s25, 1 }
  0x2e   : > { %v306_v8 = vld [vmem:[%s866_s12 + $0x38] sm:$0xff]  ;;  %v335_v9 = vld [vmem:[%s960_s1] sm:$0xff]  ;;  %v305_v11 = vld [vmem:[%s866_s12 + $0x30] sm:$0xff]  ;;  %s404_s20 = sshll.u32 %s400_s17, 4  ;;  %s385_s26 = scalar_lea.sflag [#allocation4], %s862_s18  ;;  %s405_s20 = int_to_ptr.hbm [resolvable:$true] %s404_s20 }
  0x2f   : > { %s297_s13 = scalar_lea.vmem %s962_s3, %s296_s8  ;;  %338 = vperm.xlu0 %604, %v335_v9   ;;  %v304_v12 = vld [vmem:[%s866_s12 + $0x28] sm:$0xff]  ;;  %v374_v13 = vld [vmem:[%s963_s4] sm:$0xff]  ;;  %v302_v15 = vld [vmem:[%s866_s12 + $0x18] sm:$0xff]  ;;  %s658_s11 = scalar_lea.hbm %s964_s5, 16 }
  0x30   : > { %316 = vmatpush.xpose.msra.mxu0 %v313_v1  ;;  %v303_v14 = vld [vmem:[%s866_s12 + $0x20] sm:$0xff]  ;;  %v301_v16 = vld [vmem:[%s866_s12 + $0x10] sm:$0xff]  ;;  %v300_v17 = vld [vmem:[%s866_s12 + $0x8] sm:$0xff] }
  0x31   : > { %v299_v18 = vld [vmem:[%s866_s12] sm:$0xff]  ;;  %s286_s12 = scalar_lea.vmem [#allocation5], %s539_s28 }
  0x32   : > { %v298_v19 = vld [vmem:[%s959_s0] sm:$0xff]  ;;  %s402_s19 = sshll.u32 %s286_s12, 4  ;;  %s403_s19 = int_to_ptr.vmem [resolvable:$true] %s402_s19 }
  0x33   : > { %v605_v20 = vld [vmem:[%s297_s13] ss:$0 sm:$0xff]  ;;  %s652_s13 = sshra.s32 %s405_s20, 4  ;;  %s653_s13 = int_to_ptr.hbm [resolvable:$true] %s652_s13 }
  0x34   : > { %317 = vmatpush.xpose.msra.mxu0 %v312_v2  ;;  %s654_s7 = scalar_lea.hbm %s653_s13, 8  ;;  %p659_p1 = scmp.lt.s32.totalorder %s653_s13, %s964_s5 }
  0x35   : > { %p655_p9 = scmp.ne.s32.totalorder %s653_s13, %s654_s7  ;;  %p660_p3 = scmp.lt.s32.totalorder %s658_s11, %s654_s7 }
  0x37   : > { %376 = vperm.xlu0 %604, %v374_v13   ;;  %p656_p13 = pnand %p655_p9, %p826_p11  ;;  %p661_p4 = por %p660_p3, %p659_p1 }
  0x38   : > { %318 = vmatpush.xpose.msra.mxu0 %v311_v3 }
  0x39   : > { %p657_p0 = pneg %p656_p13 }
  0x3b   : > { %p662_p7 = pnand %p661_p4, %p657_p0 }
  0x3c   : > { %319 = vmatpush.xpose.msra.mxu0 %v310_v4 }
  0x40   : > { %320 = vmatpush.xpose.msra.mxu0 %v309_v5 }
  0x44   : > { %321 = vmatpush.xpose.msra.mxu0 %v308_v6 }
  0x48   : > { %322 = vmatpush.xpose.msra.mxu0 %v307_v7 }
  0x4c   : > { %323 = vmatpush.xpose.msra.mxu0 %v306_v8 }
  0x50   : > { %324 = vmatpush.xpose.msra.mxu0 %v305_v11 }
  0x54   : > { %325 = vmatpush.xpose.msra.mxu0 %v304_v12 }
  0x58   : > { %326 = vmatpush.xpose.msra.mxu0 %v303_v14 }
  0x5c   : > { %327 = vmatpush.xpose.msra.mxu0 %v302_v15 }
  0x60   : > { %328 = vmatpush.xpose.msra.mxu0 %v301_v16 }
  0x64   : > { %329 = vmatpush.xpose.msra.mxu0 %v300_v17 }
  0x68   : > { %330 = vmatpush.xpose.msra.mxu0 %v299_v18 }
  0x6b   : > { %331 = vmatmul.f32.vlgmr.msra.gmra.mxu0 %v298_v19 }
  0xa1   : > { %v339_v21 = vpop.permute.xlu0 %338 }
  0xe8   : > { %v332_v22 = vpop.f32.mrf.mxu0 }
  0xe9   : > { %v341_v23 = vmul.f32 %v339_v21, %v332_v22 }
  0xeb   : > { %v346_v24 = vmul.f32 %v605_v20, %v341_v23 }
  0xed   : > { %v347_v25 = vmul.f32 %v346_v24, %v346_v24  ;;  %v381_v26 = vmul.f32 30.0, %v346_v24 }
  0xef   : > { %v348_v27 = vsub.f32 1.0, %v347_v25  ;;  %382 = vst [vmem:[%s286_s12] sm:$0xff] %v381_v26 }
  0xf0   : > { %665 = shalt.err (!%p662_p7)
}
  0xf1   : > { %552 = dma.vmem_to_hbm [thread:$0]  (%p826_p11), %s403_s19, 128, %s405_s20, %s385_s26   ;;  %v349_v28 = vmax.f32 %v348_v27, 0.0  ;;  %v370_v34 = vlaneseq  ;;  %v363_v44 = vmul.f32 0.87758255, %v346_v24  ;;  %v377_v46 = vpop.permute.xlu0 %376  ;;  %v541_v48 = vadd.f32 -0.23971277, %v346_v24 }
  0xf2   : > { %s542_s17 = sshll.u32 %s797_s25, 7  ;;  %s414_s20 = scalar_lea.hbm %s965_s6, %s545_s16  ;;  %vm366_vm2 = vcmp.gt.f32.partialorder %v346_v24, -0.87758255 }
  0xf3   : > { %v350_v29 = vmin.f32 %v349_v28, 1.0  ;;  %v371_v37 = vand.u32 127, %v370_v34  ;;  %v372_v39 = vstv %s542_s17  ;;  %s293_s26 = scalar_lea.vmem [#allocation6], %s539_s28  ;;  %s418_s7 = sshll.u32 %s414_s20, 4  ;;  %s419_s7 = int_to_ptr.hbm [resolvable:$true] %s418_s7 }
  0xf4   : > { %s416_s13 = sshll.u32 %s293_s26, 4  ;;  %s390_s25 = scalar_lea.sflag [#allocation7], %s862_s18  ;;  %s417_s13 = int_to_ptr.vmem [resolvable:$true] %s416_s13 }
  0xf5   : > { %606 = vrsqrt.f32 %v350_v29  ;;  %vm358_vm0 = vcmp.eq.f32.partialorder %v350_v29, inf  ;;  %v361_v40 = vand.u32 2147483648, %v350_v29  ;;  %vm360_vm1 = vcmp.eq.f32.partialorder %v350_v29, 0.0  ;;  %s680_s14 = sshra.s32 %s419_s7, 4  ;;  %s686_s28 = scalar_lea.hbm %s965_s6, 16  ;;  %s681_s14 = int_to_ptr.hbm [resolvable:$true] %s680_s14 }
  0xf6   : > { %v373_v43 = vadd.s32 %v372_v39, %v371_v37  ;;  %s682_s16 = scalar_lea.hbm %s681_s14, 8  ;;  %p687_p2 = scmp.lt.s32.totalorder %s681_s14, %s965_s6 }
  0xf7   : > { %p683_p5 = scmp.ne.s32.totalorder %s681_s14, %s682_s16  ;;  %p688_p6 = scmp.lt.s32.totalorder %s686_s28, %s682_s16 }
  0xf8   : > { %vm378_vm3 = vcmp.eq.s32.totalorder %v373_v43, %v377_v46 }
  0xf9   : > { %p684_p8 = pnand %p683_p5, %p826_p11  ;;  %p689_p9 = por %p688_p6, %p687_p2 }
  0xfb   : > { %v607_v30 = vpop.eup %606  ;;  %p685_p10 = pneg %p684_p8 }
  0xfc   : > { %v352_v31 = vmul.f32 %v607_v30, %v350_v29 }
  0xfd   : > { %p690_p13 = pnand %p689_p9, %p685_p10 }
  0xfe   : > { %v353_v32 = vmul.f32 %v607_v30, %v352_v31 }
 0x100   : > { %v354_v33 = vmul.f32 0.5, %v353_v32 }
 0x102   : > { %v355_v35 = vsub.f32 1.5, %v354_v33 }
 0x104   : > { %v356_v36 = vmul.f32 %v607_v30, %v355_v35 }
 0x106   : > { %v357_v38 = vmul.f32 %v356_v36, %v350_v29 }
 0x108   : > { %v359_v41 = vsel %vm358_vm0, %v350_v29, %v357_v38 }
 0x109   : > { %v362_v42 = vsel %vm360_vm1, %v361_v40, %v359_v41 }
 0x10a   : > { %v364_v45 = vmul.f32 0.47942555, %v362_v42 }
 0x10c   : > { %v365_v47 = vsub.f32 %v363_v44, %v364_v45 }
 0x10e   : > { %v368_v49 = vsel %vm366_vm2, %v365_v47, %v541_v48 }
 0x10f   : > { %v379_v50 = vsel %vm378_vm3, %v368_v49, %v346_v24 }
 0x110   : > { %v380_v51 = vmul.f32 30.0, %v379_v50 }
 0x112   : > { %383 = vst [vmem:[%s293_s26] sm:$0xff] %v380_v51 }
 0x113   : > { %693 = shalt.err (!%p690_p13)
}
 0x114   : > { %553 = dma.vmem_to_hbm [thread:$0]  (%p826_p11), %s417_s13, 128, %s419_s7, %s390_s25  }
 0x115 PF: > { %s430_s18 = sand.u32 1, %s724_s21   ;;  %p971_p0 = scmp.ge.s32.totalorder %s736_s24, 2 }
 0x116   : > { %s431_s17 = scalar_lea.sflag [#allocation4], %s430_s18 }
 0x117   : > { %p561_p1 = pnand %p971_p0, %p830_p12 }
 0x119   : > { %p562_p3 = pneg %p561_p1 }
 0x11b   : > { %715 = dma.done.wait (%p562_p3), %s431_s17, 128  }
 0x11c   : > { %717 = vsyncadd (%p562_p3), %s431_s17, 4294967168  ;;  %s441_s12 = scalar_lea.sflag [#allocation7], %s430_s18 }
 0x11d   : > { %719 = dma.done.wait (%p562_p3), %s441_s12, 128  }
 0x11e   : > { %721 = vsyncadd (%p562_p3), %s441_s12, 4294967168  ;;  %p23_p11 = scmp.ge.s32.totalorder %s801_s27, 4   ;;  %s972_s21 = smov %s728_s22 }
 0x11f   : > { %s973_s22 = smov %s732_s23  ;;  %s974_s23 = smov %s813_s30 }
 0x120   : > { %s975_s24 = smov %s801_s27  ;;  %25 = sbr.rel (!%p23_p11) target bundleno = 7 (0x7), region = 105 }
 0x125   :  { %447 = vsyncpa [#allocation3], 1 }
 0x126   :  { %449 = vsyncpa [#allocation3 + $0x1], 1 }
 0x127   :  { %450 = vsyncpa [#allocation4], 1 }
 0x128   :  { %452 = vsyncpa [#allocation4 + $0x1], 1 }
 0x129   :  { %453 = vsyncpa [#allocation7], 1 }
 0x12a   :  { %455 = vsyncpa [#allocation7 + $0x1], 1 }

</bundles_post_ra>
